<compile_context>
chip_gen: v7x
topology: tpu7x:2x2x1
jax: 0.10.0
libtpu: 0.0.40
codegen_flags: <defaults>
</compile_context>

<pallas_src>
import functools
import math

import jax
import jax.numpy as jnp
from jax.experimental import pallas as pl
from jax.experimental.pallas import tpu as pltpu

_EPS = 1e-8                # torch.nn.CosineSimilarity default eps
_EPS2 = _EPS * _EPS
_LANE = 128
_MiB = 1024 * 1024


def _round_up(v, m):
    return ((v + m - 1) // m) * m


# ---------------------------------------------------------------------------
# Kernels
# ---------------------------------------------------------------------------
def _cosine_rows_kernel(x_ref, y_ref, o_ref, *, inv_temp):
    """Row-wise cosine/temp: (T, H) x (T, H) -> lane-dense (1, T) output block."""
    x = x_ref[...].astype(jnp.float32)
    y = y_ref[...].astype(jnp.float32)

    dot = jnp.sum(x * y, axis=-1, keepdims=True)              # (T, 1)
    xx = jnp.sum(x * x, axis=-1, keepdims=True)                # (T, 1)
    yy = jnp.sum(y * y, axis=-1, keepdims=True)                # (T, 1)

    # rsqrt(max(ss, eps^2)) == 1 / max(||.||, eps); rsqrt runs on the EUP.
    inv = jax.lax.rsqrt(jnp.maximum(xx, _EPS2)) * jax.lax.rsqrt(
        jnp.maximum(yy, _EPS2))
    res = dot * inv * inv_temp                                 # (T, 1)
    # Lane-dense store: relayout (T,1)->(1,T) on the XLU, hidden under the
    # input DMA (kernel is HBM-bound).
    o_ref[...] = jnp.transpose(res).astype(o_ref.dtype)


def _cosine_cross_kernel(x_ref, y_ref, o_ref, inv_x_ref, *, inv_temp):
    """All-pairs cosine/temp: (TM, H) x (TN, H) -> (TM, TN)."""
    # MXU dot in the operands' native dtype (bf16 fast path), f32 accumulate,
    # contracting last-dim vs last-dim -> no materialized transpose.
    cd = jnp.result_type(x_ref.dtype, y_ref.dtype)
    dot = jax.lax.dot_general(
        x_ref[...].astype(cd), y_ref[...].astype(cd),
        dimension_numbers=(((1,), (1,)), ((), ())),
        preferred_element_type=jnp.float32)                    # (TM, TN)

    # x block only changes with the outer i axis -> compute its inverse norm
    # once per i (j == 0) into VMEM scratch and reuse across j.
    @pl.when(pl.program_id(1) == 0)
    def _():
        xf = x_ref[...].astype(jnp.float32)
        inv_x_ref[...] = jax.lax.rsqrt(
            jnp.maximum(jnp.sum(xf * xf, axis=-1, keepdims=True), _EPS2))

    yf = y_ref[...].astype(jnp.float32)
    inv_y = jax.lax.rsqrt(
        jnp.maximum(jnp.sum(yf * yf, axis=-1, keepdims=True), _EPS2))  # (TN, 1)

    o_ref[...] = (dot * inv_x_ref[...] * jnp.transpose(inv_y) *
                  inv_temp).astype(o_ref.dtype)


# ---------------------------------------------------------------------------
# Tiling helpers
# ---------------------------------------------------------------------------
def _pick_tile_rows(n, h, itemsize):
    """~4 MiB per input block (byte-based, so bf16 tiles carry 2x the rows).

    2 inputs x 2 buffers ~= 16 MiB; we raise vmem_limit_bytes explicitly so this
    is safe on v5e (16 MiB default scoped) and well under v7x's 64 MiB VMEM.
    """
    target_bytes = 4 * _MiB
    t = max(_LANE, ((target_bytes // max(h * itemsize, 1)) // _LANE) * _LANE)
    if t >= n:
        # Whole problem fits in one block. If N is big enough, still split into
        # >= 2 grid steps so v7x's two TensorCores both get work.
        if n >= 2048:
            return _round_up((n + 1) // 2, _LANE)
        return n
    return t


def _pick_tiles_cross(bx, by, h, itemsize):
    """Start at 512x512 (multiples of 128) and shrink to fit a VMEM budget."""
    budget = 24 * _MiB

    def blk_bytes(tm, tn):
        return 2 * (tm + tn) * h * itemsize + 2 * tm * tn * 4

    tm = bx if bx <= 512 else 512
    tn = by if by <= 512 else 512
    while blk_bytes(tm, tn) > budget and max(tm, tn) > _LANE:
        if tm >= tn and tm > _LANE:
            tm = max(_LANE, _round_up(tm // 2, _LANE))
        else:
            tn = max(_LANE, _round_up(tn // 2, _LANE))
    return tm, tn


# ---------------------------------------------------------------------------
# Paths
# ---------------------------------------------------------------------------
def _similarity_rows(x, y, temp):
    lead = x.shape[:-1]
    H = x.shape[-1]
    N = int(math.prod(lead)) if lead else 1
    out_dtype = jnp.result_type(x.dtype, y.dtype)

    x2 = x.reshape(N, H)
    y2 = y.reshape(N, H)
    itemsize = max(x2.dtype.itemsize, y2.dtype.itemsize)

    tile_n = _pick_tile_rows(N, H, itemsize)
    grid = (pl.cdiv(N, tile_n),)

    blk_in = tile_n * H * (x2.dtype.itemsize + y2.dtype.itemsize)
    vmem_limit = int(min(max(2 * blk_in + 2 * tile_n * 4 + 4 * _MiB,
                             32 * _MiB), 48 * _MiB))

    kernel = functools.partial(_cosine_rows_kernel, inv_temp=float(1.0 / temp))
    out = pl.pallas_call(
        kernel,
        out_shape=jax.ShapeDtypeStruct((1, N), out_dtype),
        grid=grid,
        in_specs=[
            pl.BlockSpec((tile_n, H), lambda i: (i, 0)),
            pl.BlockSpec((tile_n, H), lambda i: (i, 0)),
        ],
        out_specs=pl.BlockSpec((1, tile_n), lambda i: (0, i)),
        compiler_params=pltpu.CompilerParams(
            dimension_semantics=("parallel",),
            vmem_limit_bytes=vmem_limit),
    )(x2, y2)

    return out.reshape(lead)


def _similarity_cross(x2, y2, temp):
    """x2: (Bx, H), y2: (By, H) -> (Bx, By) without materializing broadcasts."""
    Bx, H = x2.shape
    By, _ = y2.shape
    out_dtype = jnp.result_type(x2.dtype, y2.dtype)
    itemsize = max(x2.dtype.itemsize, y2.dtype.itemsize)

    tm, tn = _pick_tiles_cross(Bx, By, H, itemsize)
    grid = (pl.cdiv(Bx, tm), pl.cdiv(By, tn))

    blk_bytes = (2 * (tm + tn) * H * itemsize + 2 * tm * tn * 4
                 + tm * _LANE * 4)  # + padded (tm,1) scratch
    vmem_limit = int(min(max(blk_bytes + 4 * _MiB, 32 * _MiB), 48 * _MiB))

    kernel = functools.partial(_cosine_cross_kernel, inv_temp=float(1.0 / temp))
    out = pl.pallas_call(
        kernel,
        out_shape=jax.ShapeDtypeStruct((Bx, By), out_dtype),
        grid=grid,
        in_specs=[
            pl.BlockSpec((tm, H), lambda i, j: (i, 0)),
            pl.BlockSpec((tn, H), lambda i, j: (j, 0)),
        ],
        out_specs=pl.BlockSpec((tm, tn), lambda i, j: (i, j)),
        scratch_shapes=[pltpu.VMEM((tm, 1), jnp.float32)],
        compiler_params=pltpu.CompilerParams(
            # j must be sequential: the x-norm scratch written at j == 0 is
            # reused across the inner j axis. i stays parallel for megacore.
            dimension_semantics=("parallel", "arbitrary"),
            vmem_limit_bytes=vmem_limit),
    )(x2, y2)

    return out


def similarity(x, y, temp):
    """Cosine similarity along the last dim, divided by temp (== Similarity.forward).

    Accepts same-shape inputs (..., H) -> (...), or the SimCSE broadcast pattern
    x:(Bx, 1, H), y:(1, By, H) -> (Bx, By) without materializing the broadcast
    in HBM. bf16 inputs stay bf16 on the MXU / DMA path; norm math is f32.
    """
    if x.shape == y.shape:
        return _similarity_rows(x, y, temp)

    if (x.ndim == 3 and y.ndim == 3 and x.shape[1] == 1 and y.shape[0] == 1
            and x.shape[2] == y.shape[2]):
        return _similarity_cross(x[:, 0, :], y[0, :, :], temp)

    # Generic broadcasting fallback (materializes copies).
    xb, yb = jnp.broadcast_arrays(x, y)
    return _similarity_rows(xb, yb, temp)


# ---------------------------------------------------------------------------
# Demo / correctness check
# ---------------------------------------------------------------------------
if __name__ == "__main__":
    key = jax.random.PRNGKey(0)
    kx, ky = jax.random.split(key)

    B, S, H = 2, 8, 32
    temp = 0.05  # Similarity(temp=0.05), SimCSE-style usage

    x = jax.random.normal(kx, (B, S, H), dtype=jnp.float32)
    y = jax.random.normal(ky, (B, S, H), dtype=jnp.float32)

    # --- Path 1: same-shape inputs (B, S, H) -> (B, S) ---
    out = jax.block_until_ready(similarity(x, y, temp))

    dot = jnp.sum(x * y, axis=-1)
    nx = jnp.maximum(jnp.linalg.norm(x, axis=-1), _EPS)
    ny = jnp.maximum(jnp.linalg.norm(y, axis=-1), _EPS)
    ref = dot / (nx * ny) / temp
    assert out.shape == (B, S)
    assert jnp.allclose(out, ref, atol=1e-4, rtol=1e-4)

    # --- Path 2: SimCSE broadcast x:(B,1,H) vs y:(1,B,H) -> (B, B) ---
    xz = x[:, 0, :].reshape(B, 1, H)
    yz = y[:, 1, :].reshape(1, B, H)
    out2 = jax.block_until_ready(similarity(xz, yz, temp))

    dot2 = jnp.einsum("id,jd->ij", xz[:, 0, :], yz[0, :, :])
    nx2 = jnp.maximum(jnp.linalg.norm(xz[:, 0, :], axis=-1), _EPS)
    ny2 = jnp.maximum(jnp.linalg.norm(yz[0, :, :], axis=-1), _EPS)
    ref2 = dot2 / (nx2[:, None] * ny2[None, :]) / temp
    assert out2.shape == (B, B)
    assert jnp.allclose(out2, ref2, atol=1e-4, rtol=1e-4)

    print("KERNEL_OK")
</pallas_src>

<mosaic_0001>
module attributes {stable_mosaic.version = 11 : i64} {
  func.func @_cosine_rows_kernel(%arg0: i32, %arg1: memref<16x32xf32, #tpu.memory_space<vmem>>, %arg2: memref<16x32xf32, #tpu.memory_space<vmem>>, %arg3: memref<1x16xf32, #tpu.memory_space<vmem>>) attributes {dimension_semantics = [#tpu.dimension_semantics<parallel>], iteration_bounds = array<i64: 1>, scalar_prefetch = 0 : i64, scratch_operands = 0 : i64, tpu.core_type = #tpu.core_type<tc>, window_params = [{transform_indices = @transform_0, window_bounds = array<i64: 16, 32>}, {transform_indices = @transform_1, window_bounds = array<i64: 16, 32>}, {transform_indices = @transform_2, window_bounds = array<i64: 1, 16>}]} {
    %c0 = arith.constant 0 : index
    %c0_0 = arith.constant 0 : index
    %0 = vector.load %arg1[%c0, %c0_0] : memref<16x32xf32, #tpu.memory_space<vmem>>, vector<16x32xf32>
    %c0_1 = arith.constant 0 : index
    %c0_2 = arith.constant 0 : index
    %1 = vector.load %arg2[%c0_1, %c0_2] : memref<16x32xf32, #tpu.memory_space<vmem>>, vector<16x32xf32>
    %2 = arith.mulf %0, %1 : vector<16x32xf32>
    %cst = arith.constant dense<0.000000e+00> : vector<16xf32>
    %3 = vector.multi_reduction <add>, %2, %cst [1] : vector<16x32xf32> to vector<16xf32>
    %4 = vector.shape_cast %3 : vector<16xf32> to vector<16x1xf32>
    %5 = arith.mulf %0, %0 : vector<16x32xf32>
    %cst_3 = arith.constant dense<0.000000e+00> : vector<16xf32>
    %6 = vector.multi_reduction <add>, %5, %cst_3 [1] : vector<16x32xf32> to vector<16xf32>
    %7 = vector.shape_cast %6 : vector<16xf32> to vector<16x1xf32>
    %8 = arith.mulf %1, %1 : vector<16x32xf32>
    %cst_4 = arith.constant dense<0.000000e+00> : vector<16xf32>
    %9 = vector.multi_reduction <add>, %8, %cst_4 [1] : vector<16x32xf32> to vector<16xf32>
    %10 = vector.shape_cast %9 : vector<16xf32> to vector<16x1xf32>
    %cst_5 = arith.constant 1.000000e-16 : f32
    %11 = vector.broadcast %cst_5 : f32 to vector<16x1xf32>
    %12 = arith.maximumf %7, %11 : vector<16x1xf32>
    %13 = math.rsqrt %12 : vector<16x1xf32>
    %cst_6 = arith.constant 1.000000e-16 : f32
    %14 = vector.broadcast %cst_6 : f32 to vector<16x1xf32>
    %15 = arith.maximumf %10, %14 : vector<16x1xf32>
    %16 = math.rsqrt %15 : vector<16x1xf32>
    %17 = arith.mulf %13, %16 : vector<16x1xf32>
    %18 = arith.mulf %4, %17 : vector<16x1xf32>
    %cst_7 = arith.constant 2.000000e+01 : f32
    %19 = vector.broadcast %cst_7 : f32 to vector<16x1xf32>
    %20 = arith.mulf %18, %19 : vector<16x1xf32>
    %21 = tpu.transpose %20, [1, 0] : vector<16x1xf32> -> vector<1x16xf32>
    %c0_8 = arith.constant 0 : index
    %c0_9 = arith.constant 0 : index
    %22 = vector.load %arg3[%c0_8, %c0_9] : memref<1x16xf32, #tpu.memory_space<vmem>>, vector<1x16xf32>
    tpu.vector_store %arg3[%c0_8, %c0_9], %21 {strides = array<i32>} : memref<1x16xf32, #tpu.memory_space<vmem>>, vector<1x16xf32>,
    return
  }
  func.func @transform_0(%arg0: i32) -> (i32, i32) {
    %c0_i32 = arith.constant 0 : i32
    %c0_i32_0 = arith.constant 0 : i32
    return %arg0, %c0_i32 : i32, i32
  }
  func.func @transform_1(%arg0: i32) -> (i32, i32) {
    %c0_i32 = arith.constant 0 : i32
    %c0_i32_0 = arith.constant 0 : i32
    return %arg0, %c0_i32 : i32, i32
  }
  func.func @transform_2(%arg0: i32) -> (i32, i32) {
    %c0_i32 = arith.constant 0 : i32
    %c0_i32_0 = arith.constant 0 : i32
    return %c0_i32, %arg0 : i32, i32
  }
}

</mosaic_0001>

<bundles_post_ra>
// kernel: tpu_custom_call.1
= control target key start
LH: loop header
LB: loop body
LE: loop exit
PB: predicated region body
PF: predicated region fallthrough
CT: control target
= control target key end

     0   :  { %7 = vsyncpa [#allocation3], 0  ;;  %s281_s0 = inlined_call_operand.hbm [shape: f32[16,32], index: 0, kind: input, shape index: {}]   ;;  %s282_s1 = inlined_call_operand.hbm [shape: f32[16,32], index: 1, kind: input, shape index: {}]   ;;  %s283_s2 = inlined_call_operand.hbm [shape: f32[1,16], index: 2, kind: output, shape index: {}]  }
   0x1   :  { %8 = vsyncpa [#allocation6], 0 }
   0x2   :  { %9 = vsyncpa [#allocation4], 0  ;;  %s219_s9 = smov [#allocation2]   ;;  %s147_s13 = scalar_lea.hbm %s281_s0, 256 }
   0x3   :  { %s15_s10 = sshll.u32 %s219_s9, 4  ;;  %p148_p0 = scmp.ne.s32.totalorder %s281_s0, %s147_s13  ;;  %s16_s10 = int_to_ptr.vmem [resolvable:$true] %s15_s10 }
   0x4   :  { %p151_p1 = scmp.lt.u32.totalorder %s147_s13, %s281_s0 }
   0x6   :  { %p153_p2 = pnand %p151_p1, %p148_p0 }
   0x8   :  { %156 = shalt.err (!%p153_p2)
}
   0x9   :  { %s157_s18 = scalar_lea.vmem %s16_s10, 256  ;;  %p162_p4 = scmp.lt.s32.totalorder %s16_s10, %s16_s10 }
   0xa   :  { %p158_p3 = scmp.ne.s32.totalorder %s16_s10, %s157_s18  ;;  %p163_p5 = scmp.lt.s32.totalorder %s157_s18, %s157_s18 }
   0xc   :  { %p164_p6 = por %p163_p5, %p162_p4 }
   0xe   :  { %p165_p7 = pnand %p164_p6, %p158_p3 }
  0x10   :  { %168 = shalt.err (!%p165_p7)
}
  0x11   :  { %s220_s19 = smov 128   ;;  %s221_s20 = smov 8  }
  0x12   :  { %21 = dma.hbm_to_vmem [thread:$0]  %s281_s0, 256, %s16_s10, [#allocation3], %s220_s19, %s220_s19, %s221_s20  }
  0x13   :  { %s222_s23 = smov [#allocation5]   ;;  %s169_s27 = scalar_lea.hbm %s282_s1, 256 }
  0x14   :  { %s27_s24 = sshll.u32 %s222_s23, 4  ;;  %p170_p8 = scmp.ne.s32.totalorder %s282_s1, %s169_s27  ;;  %s28_s24 = int_to_ptr.vmem [resolvable:$true] %s27_s24 }
  0x15   :  { %p173_p9 = scmp.lt.u32.totalorder %s169_s27, %s282_s1 }
  0x17   :  { %p175_p10 = pnand %p173_p9, %p170_p8 }
  0x19   :  { %178 = shalt.err (!%p175_p10)
}
  0x1a   :  { %s179_s4 = scalar_lea.vmem %s28_s24, 256  ;;  %p184_p12 = scmp.lt.s32.totalorder %s28_s24, %s28_s24 }
  0x1b   :  { %p180_p11 = scmp.ne.s32.totalorder %s28_s24, %s179_s4  ;;  %p185_p13 = scmp.lt.s32.totalorder %s179_s4, %s179_s4 }
  0x1d   :  { %p186_p0 = por %p185_p13, %p184_p12 }
  0x1f   :  { %p187_p1 = pnand %p186_p0, %p180_p11 }
  0x21   :  { %190 = shalt.err (!%p187_p1)
}
  0x22   :  { %33 = dma.hbm_to_vmem [thread:$0]  %s282_s1, 256, %s28_s24, [#allocation6], %s220_s19, %s220_s19, %s221_s20  }
  0x23   :  { %213 = dma.done.wait [#allocation3], 256  }
  0x24   :  { %214 = vsyncadd [#allocation3], 4294967040 }
  0x25   :  { %215 = dma.done.wait [#allocation6], 256  }
  0x26   :  { %216 = vsyncadd [#allocation6], 4294967040  ;;  %v41_v0 = vld [vmem:[#allocation2 + $0x8] sm:$0xff]  ;;  %vm46_vm0 = vcmask 261120   ;;  %v40_v1 = vld [vmem:[#allocation2] sm:$0xff]  ;;  %s223_s1 = smov [#allocation7]  }
  0x27   :  { %v43_v2 = vld [vmem:[#allocation5 + $0x8] sm:$0xff]  ;;  %v54_v3 = vmul.f32 %v41_v0, %v41_v0  ;;  %v53_v4 = vmul.f32 %v40_v1, %v40_v1  ;;  %v42_v6 = vld [vmem:[#allocation5] sm:$0xff]  ;;  %s123_s6 = sshll.u32 %s223_s1, 4  ;;  %vm115_vm1 = vcmask 122880   ;;  %s124_s6 = int_to_ptr.vmem [resolvable:$true] %s123_s6 }
  0x28   :  { %v62_v5 = vmul.f32 %v43_v2, %v43_v2  ;;  %v61_v7 = vmul.f32 %v42_v6, %v42_v6  ;;  %v45_v12 = vmul.f32 %v43_v2, %v41_v0  ;;  %v44_v13 = vmul.f32 %v42_v6, %v40_v1  ;;  %s191_s7 = scalar_lea.vmem %s124_s6, 16  ;;  %s195_s8 = scalar_lea.vmem %s124_s6, 32 }
  0x29   :  { %v58_v8 = vsel %vm46_vm0, %v54_v3, 0.0  ;;  %v55_v9 = vsel %vm46_vm0, %v53_v4, 0.0  ;;  %p192_p2 = scmp.ne.s32.totalorder %s124_s6, %s191_s7  ;;  %p196_p3 = scmp.lt.s32.totalorder %s124_s6, %s124_s6 }
  0x2a   :  { %59 = vadd.xlane.f32.xlu1 %v58_v8  ;;  %56 = vadd.xlane.f32.xlu0 %v55_v9  ;;  %v66_v10 = vsel %vm46_vm0, %v62_v5, 0.0  ;;  %v63_v11 = vsel %vm46_vm0, %v61_v7, 0.0  ;;  %v50_v14 = vsel %vm46_vm0, %v45_v12, 0.0  ;;  %v47_v15 = vsel %vm46_vm0, %v44_v13, 0.0  ;;  %p197_p4 = scmp.lt.s32.totalorder %s195_s8, %s191_s7 }
  0x2c   :  { %p198_p5 = por %p197_p4, %p196_p3 }
  0x2e   :  { %67 = vadd.xlane.f32.xlu1 %v66_v10  ;;  %64 = vadd.xlane.f32.xlu0 %v63_v11  ;;  %p199_p6 = pnand %p198_p5, %p192_p2 }
  0x32   :  { %51 = vadd.xlane.f32.xlu1 %v50_v14  ;;  %48 = vadd.xlane.f32.xlu0 %v47_v15 }
  0xb7   :  { %v60_v16 = vpop.xlane.xlu1 %59  ;;  %v57_v17 = vpop.xlane.xlu0 %56 }
  0xb8   :  { %v70_v18 = vmax.f32 %v60_v16, 1e-16  ;;  %v69_v19 = vmax.f32 %v57_v17, 1e-16 }
  0xba   :  { %139 = vrsqrt.f32 %v70_v18 }
  0xbb   :  { %v68_v20 = vpop.xlane.xlu1 %67  ;;  %v65_v21 = vpop.xlane.xlu0 %64  ;;  %141 = vrsqrt.f32 %v69_v19 }
  0xbc   :  { %v74_v22 = vmax.f32 %v68_v20, 1e-16  ;;  %v73_v23 = vmax.f32 %v65_v21, 1e-16 }
  0xbe   :  { %143 = vrsqrt.f32 %v74_v22 }
  0xbf   :  { %145 = vrsqrt.f32 %v73_v23  ;;  %v49_v28 = vpop.xlane.xlu0 %48  ;;  %v52_v31 = vpop.xlane.xlu1 %51 }
  0xc4   :  { %v140_v24 = vpop.eup %139 }
  0xc5   :  { %v142_v25 = vpop.eup %141 }
  0xc8   :  { %v144_v26 = vpop.eup %143 }
  0xc9   :  { %v146_v27 = vpop.eup %145  ;;  %v78_v29 = vmul.f32 %v144_v26, %v140_v24 }
  0xca   :  { %v77_v30 = vmul.f32 %v146_v27, %v142_v25 }
  0xcb   :  { %v80_v33 = vmul.f32 %v78_v29, %v52_v31 }
  0xcc   :  { %v79_v32 = vmul.f32 %v77_v30, %v49_v28 }
  0xcd   :  { %v82_v35 = vmul.f32 20.0, %v80_v33 }
  0xce   :  { %v81_v34 = vmul.f32 20.0, %v79_v32 }
  0xd0   :  { %83 = vxpose.xlu0.b32.start [1/2] (short) (narrow) %v81_v34, 8 }
  0xd4   :  { %84 = vxpose.xlu0.b32.end [2/2] (short) (narrow) %v82_v35, 8 }
 0x150   :  { %v99_v36 = vpop.trf.xlu0 }
 0x151   :  { %116 = vst.msk [vmem:[#allocation7] sm:$0x1] %vm115_vm1, %v99_v36 }
 0x152   :  { %202 = shalt.err (!%p199_p6)
}
 0x153   :  { %s203_s11 = scalar_lea.hbm %s283_s2, 16 }
 0x154   :  { %p204_p7 = scmp.ne.s32.totalorder %s283_s2, %s203_s11  ;;  %p207_p8 = scmp.lt.u32.totalorder %s203_s11, %s283_s2 }
 0x156   :  { %p209_p9 = pnand %p207_p8, %p204_p7 }
 0x158   :  { %212 = shalt.err (!%p209_p9)
}
 0x159   :  { %126 = dma.vmem_to_hbm [thread:$0]  %s124_s6, 16, %s283_s2, [#allocation4]  }
 0x15a   :  { %217 = dma.done.wait [#allocation4], 16  }
 0x15b   :  { %218 = vsyncadd [#allocation4], 4294967280 }
 0x15c   :  { %130 = vsyncpa [#allocation3], 1 }
 0x15d   :  { %131 = vsyncpa [#allocation6], 1 }
 0x15e   :  { %132 = vsyncpa [#allocation4], 1 }

</bundles_post_ra>
